<compile_context>
chip_gen: v7x
topology: tpu7x:2x2x1
jax: 0.10.0
libtpu: 0.0.40
codegen_flags: <defaults>
</compile_context>

<pallas_src>
import functools

import numpy as np
import jax
import jax.numpy as jnp
from jax import lax
from jax.experimental import pallas as pl
from jax.experimental.pallas import tpu as pltpu


def _round_up(x, m):
    return ((x + m - 1) // m) * m


# -----------------------------------------------------------------------------
# Tiling plan
# -----------------------------------------------------------------------------
def _plan_tiles(n, tile_n=512, tile_k=1024):
    """Pick row/contraction tile sizes and padded extents for an [n, n] A_hat."""
    # Row tiles: large to amortize per-step overhead and M re-streaming, but
    # keep >= 2 row tiles when possible so the "parallel" row axis can shard
    # across TensorCores (v7x megacore).
    tile_n = min(tile_n, _round_up(n, 8))
    while tile_n > 16 and _round_up(n, tile_n) // tile_n < 2:
        tile_n = max(16, ((tile_n // 2) // 8) * 8)
    n_pad = _round_up(n, tile_n)

    # K tiles: >= 1 MB of A per step for large graphs.  Pad K to a multiple of
    # 128 and cap the tile-induced zero-column overshoot at ~12% of the
    # A-stream (instead of always rounding up to tile_k).
    k128 = _round_up(n, 128)
    tile_k = max(128, (min(tile_k, k128) // 128) * 128)
    while tile_k > 128 and (_round_up(k128, tile_k) - k128) * 8 > k128:
        tile_k = max(128, ((tile_k // 2) // 128) * 128)
    k_pad = _round_up(k128, tile_k)
    return tile_n, n_pad, tile_k, k_pad


def _pad_a_bf16(a_norm, n_pad, k_pad):
    """Cast A_hat to bf16 and zero-pad once; shared by both GCN layers."""
    n = a_norm.shape[0]
    return jnp.zeros((n_pad, k_pad), jnp.bfloat16).at[:n, :n].set(
        a_norm.astype(jnp.bfloat16))


# -----------------------------------------------------------------------------
# Pallas kernel: tiled dense propagation   out = A_hat @ M (+ bias, opt. ReLU)
# -----------------------------------------------------------------------------
def _gcn_prop_kernel(a_ref, m_ref, b_ref, o_ref, acc_ref, *, apply_relu,
                     m_resident):
    # a_ref: (tile_n, tile_k) bf16 row/col tile of normalized adjacency
    # m_ref: (tile_k, h_pad)  bf16 K-tile of X @ W   (streamed mode)
    #        (k_pad,  h_pad)  bf16 full X @ W        (VMEM-resident mode)
    # b_ref: (1, h_pad)       f32 bias (lane-padded)
    # acc_ref: (tile_n, h_pad) f32 accumulator resident across the k axis
    k = pl.program_id(1)
    tile_k = a_ref.shape[1]

    if m_resident:
        start = pl.multiple_of(k * tile_k, 128)
        m = m_ref[pl.ds(start, tile_k), :]
    else:
        m = m_ref[...]

    prod = jnp.dot(a_ref[...], m, preferred_element_type=jnp.float32)

    @pl.when(k == 0)
    def _():
        acc_ref[...] = prod          # assign on first K step (skip zero-init)

    @pl.when(k > 0)
    def _():
        acc_ref[...] += prod

    @pl.when(k == pl.num_programs(1) - 1)
    def _():
        h = acc_ref[...] + b_ref[...]
        if apply_relu:
            h = jnp.maximum(h, 0.0)
        o_ref[...] = h.astype(o_ref.dtype)


def gcn_propagate_pallas(a_p, m, bias, n_rows, tile_n, tile_k, *,
                         apply_relu, out_dtype=jnp.float32):
    """relu?(A_hat @ M + bias) with pre-padded bf16 A_hat [n_pad, k_pad]."""
    n_pad, k_pad = a_p.shape
    n_k, h = m.shape
    h_pad = _round_up(h, 128)        # lane-dense output (no masked stores)

    # bf16 M stream (f32 accumulation in-kernel); zero padding keeps padded
    # rows/cols mathematically inert.
    m_p = jnp.zeros((k_pad, h_pad), jnp.bfloat16).at[:n_k, :h].set(
        m.astype(jnp.bfloat16))
    b_p = jnp.zeros((1, h_pad), jnp.float32).at[0, :h].set(
        bias.astype(jnp.float32))

    grid = (n_pad // tile_n, k_pad // tile_k)

    # VMEM-resident M when it is small: constant block index => DMA'd once,
    # eliminating the per-row-tile M re-stream.  Gated small enough (<=4 MB)
    # to fit comfortably inside default scoped VMEM on v5e/v6e/v7x.
    m_resident = (k_pad > tile_k) and (k_pad * h_pad * 2 <= (4 << 20))
    if m_resident:
        m_spec = pl.BlockSpec((k_pad, h_pad), lambda i, k: (0, 0))
    else:
        m_spec = pl.BlockSpec((tile_k, h_pad), lambda i, k: (k, 0))

    kernel = functools.partial(_gcn_prop_kernel, apply_relu=apply_relu,
                               m_resident=m_resident)
    out = pl.pallas_call(
        kernel,
        out_shape=jax.ShapeDtypeStruct((n_pad, h_pad), out_dtype),
        grid_spec=pltpu.PrefetchScalarGridSpec(
            num_scalar_prefetch=0,
            grid=grid,
            in_specs=[
                pl.BlockSpec((tile_n, tile_k), lambda i, k: (i, k)),  # A tile
                m_spec,                                               # M
                pl.BlockSpec((1, h_pad), lambda i, k: (0, 0)),        # bias
            ],
            out_specs=pl.BlockSpec((tile_n, h_pad), lambda i, k: (i, 0)),
            scratch_shapes=[pltpu.VMEM((tile_n, h_pad), jnp.float32)],
        ),
        compiler_params=pltpu.CompilerParams(
            dimension_semantics=("parallel", "arbitrary")),
    )(a_p, m_p, b_p)
    return out[:n_rows, :h]


@jax.jit
def backbone_pallas(params, feat, a_norm):
    n = a_norm.shape[0]
    tile_n, n_pad, tile_k, k_pad = _plan_tiles(n)
    # Single bf16 pad/cast of A_hat, shared by both layers.
    a_p = _pad_a_bf16(a_norm, n_pad, k_pad)
    # Layer 1: M1 = X @ W1 once (O(N*F*H) glue), then the hot A-matmul in
    # Pallas (+bias, ReLU), emitting bf16 directly (halves writeback/re-read).
    m1 = feat @ params["w1"]
    h1 = gcn_propagate_pallas(a_p, m1, params["b1"], n, tile_n, tile_k,
                              apply_relu=True, out_dtype=jnp.bfloat16)
    # Layer 2: M2 = H1 @ W2 once, then A-matmul in Pallas (+bias), f32 logits.
    m2 = h1.astype(jnp.float32) @ params["w2"]
    return gcn_propagate_pallas(a_p, m2, params["b2"], n, tile_n, tile_k,
                                apply_relu=False, out_dtype=jnp.float32)


# -----------------------------------------------------------------------------
# Pure-JAX mirrors of the backbone (gradients inside the purify loop + checks).
# -----------------------------------------------------------------------------
def backbone_ref(params, feat, a_norm):
    h = a_norm @ (feat @ params["w1"]) + params["b1"]
    h = jax.nn.relu(h)
    return a_norm @ (h @ params["w2"]) + params["b2"]


def backbone_ref_bf16(params, feat, a_norm):
    # Mirrors the Pallas numerics (bf16 A / M / H1 streams, f32 accumulation).
    def bf(x):
        return x.astype(jnp.bfloat16).astype(jnp.float32)
    a_bf = bf(a_norm)
    m1 = bf(feat @ params["w1"])
    h1 = bf(jax.nn.relu(a_bf @ m1 + params["b1"]))
    m2 = bf(h1 @ params["w2"])
    return a_bf @ m2 + params["b2"]


def embedding_ref(params, feat, a_norm):  # Backbone.get_embedding == conv1 only
    return a_norm @ (feat @ params["w1"]) + params["b1"]


def gcn_norm_dense(edge_index, edge_weight, n):
    """D^-1/2 (A + I) D^-1/2 as a dense [N, N] matrix (PyG gcn_norm semantics)."""
    a = jnp.zeros((n, n), jnp.float32).at[edge_index[0], edge_index[1]].add(edge_weight)
    a = a + jnp.eye(n, dtype=jnp.float32)
    deg = a.sum(axis=1)
    dinv = jnp.where(deg > 0, jax.lax.rsqrt(deg), 0.0)
    return dinv[:, None] * a * dinv[None, :]


def inner(t1, t2):
    t1n = t1 / (jnp.linalg.norm(t1, axis=1, keepdims=True) + 1e-15)
    t2n = t2 / (jnp.linalg.norm(t2, axis=1, keepdims=True) + 1e-15)
    return jnp.mean(1.0 - jnp.sum(t1n * t2n, axis=1))


# ---- torch.optim.Adam equivalent (defaults: betas=(0.9, 0.999), eps=1e-8) ----
def adam_init(x):
    return (jnp.zeros_like(x), jnp.zeros_like(x), 0)


def adam_step(x, g, state, lr, b1=0.9, b2=0.999, eps=1e-8):
    m, v, t = state
    t = t + 1
    m = b1 * m + (1.0 - b1) * g
    v = b2 * v + (1.0 - b2) * g * g
    m_hat = m / (1.0 - b1 ** t)
    v_hat = v / (1.0 - b2 ** t)
    return x - lr * m_hat / (jnp.sqrt(v_hat) + eps), (m, v, t)


# ---- on-device bisection / projection (no host float() round-trips) ---------
def bisection_jax(values, a, b, n_perturbations, epsilon=1e-5, iter_max=100000):
    def func(x):
        return jnp.clip(values - x, 0.0, 1.0).sum() - n_perturbations

    def cond(state):
        i, a_, b_, _ = state
        return jnp.logical_and(i < iter_max, (b_ - a_) > epsilon)

    def body(state):
        i, a_, b_, _ = state
        miu = (a_ + b_) / 2.0
        fm = func(miu)
        go_left = fm * func(a_) < 0
        new_a = jnp.where(go_left, a_, miu)
        new_b = jnp.where(go_left, miu, b_)
        # emulate the `fm == 0` break by collapsing the interval
        new_a = jnp.where(fm == 0.0, miu, new_a)
        new_b = jnp.where(fm == 0.0, miu, new_b)
        return (i + 1, new_a, new_b, miu)

    _, _, _, miu = lax.while_loop(cond, body, (jnp.int32(0), a, b, a))
    return miu


def project_jax(n_perturbations, values, eps):
    def do_bisect(v):
        left = (v - 1.0).min()
        right = v.max()
        miu = bisection_jax(v, left, right, n_perturbations)
        return jnp.clip(v - miu, eps, 1.0 - eps)

    def no_bisect(v):
        return jnp.clip(v, eps, 1.0 - eps)

    return lax.cond(jnp.clip(values, 0.0, 1.0).sum() > n_perturbations,
                    do_bisect, no_bisect, values)


# -----------------------------------------------------------------------------
# Purification loop (OptimizeFeatureAndEdge.__call__) — plain JAX glue.
# -----------------------------------------------------------------------------
def purify_graph(params, feat, edge_index, k_undirected, train_mask, labels,
                 epochs=2, loop_feat=1, loop_adj=1, ratio=0.1,
                 lr_feat=0.01, lr_adj=0.01):
    n = feat.shape[0]
    e = edge_index.shape[1]
    eps = 1e-7
    n_perturbations = int(ratio * e // 2)
    n_upper = int(k_undirected.max()) + 1

    w_pert = jnp.full((n_upper,), eps, dtype=jnp.float32)   # perturbed_edge_weight
    delta_feat = jnp.zeros_like(feat)
    edge_weight = jnp.ones((e,), jnp.float32)

    adam_feat = adam_init(delta_feat)
    adam_adj = adam_init(w_pert)
    rng = jax.random.PRNGKey(1)

    def modified_weights(base_ew, w):
        # to_symmetric + coalesce('sum') then flip weights >= 1 (dense support
        # fixed to the original edges, as sample_random_block does).
        ew = base_ew + w[k_undirected]
        return jnp.where(ew >= 1.0, 2.0 - ew, ew)

    def test_time_loss(cur_feat, ew, key):
        k_drop, k_shuf = jax.random.split(key)
        a_full = gcn_norm_dense(edge_index, ew, n)
        out = backbone_ref(params, cur_feat, a_full)
        logp = jax.nn.log_softmax(out, axis=-1)
        nll = -jnp.take_along_axis(logp, labels[:, None], axis=1)[:, 0]
        ce = jnp.sum(nll * train_mask) / jnp.sum(train_mask)
        # dropedge p=0.5, dropedge p=0.0, and feature shuffle augmentations
        keep = jax.random.bernoulli(k_drop, 0.5, (e,)).astype(jnp.float32)
        a1 = gcn_norm_dense(edge_index, ew * keep, n)
        o1 = embedding_ref(params, cur_feat, a1)
        o2 = embedding_ref(params, cur_feat, a_full)
        perm = jax.random.permutation(k_shuf, n)
        o3 = embedding_ref(params, cur_feat[perm], a_full)
        return ce + inner(o1, o2) - inner(o2, o3)

    for _ in range(epochs // (loop_feat + loop_adj)):
        # --- feature loop ---
        for _ in range(loop_feat):
            rng, sub = jax.random.split(rng)
            g = jax.grad(lambda d: test_time_loss(feat + d, edge_weight, sub))(delta_feat)
            delta_feat, adam_feat = adam_step(delta_feat, g, adam_feat, lr_feat)
            delta_feat = jnp.clip(delta_feat, -1.0, 1.0)
        n_feat = feat + delta_feat
        # --- adjacency loop ---
        for _ in range(loop_adj):
            rng, sub = jax.random.split(rng)
            base_ew = edge_weight
            g = jax.grad(
                lambda w: test_time_loss(n_feat, modified_weights(base_ew, w), sub))(w_pert)
            g = jnp.where(jnp.isnan(g), eps, g)
            # Matches PyTorch reference: the first get_modified_adj (pre-loss)
            # reassigns edge_weight, and the second (post-step) uses that
            # already-modified edge_weight as its base.
            edge_weight = modified_weights(base_ew, w_pert)       # pre-loss
            w_pert, adam_adj = adam_step(w_pert, g, adam_adj, lr_adj)
            w_pert = jnp.where(w_pert < eps, eps, w_pert)
            w_pert = project_jax(n_perturbations, w_pert, eps)
            edge_weight = modified_weights(edge_weight, w_pert)   # post-step

    n_feat = feat + delta_feat
    return n_feat, edge_index, edge_weight


def gtrans_forward(params, feat, edge_index, k_undirected, train_mask, labels):
    n = feat.shape[0]
    n_feat, ei, ew = purify_graph(params, feat, edge_index, k_undirected,
                                  train_mask, labels)
    a_norm = gcn_norm_dense(ei, ew, n)
    out = backbone_pallas(params, n_feat, a_norm)
    return out, (n_feat, a_norm)


# -----------------------------------------------------------------------------
if __name__ == "__main__":
    N, IN_FEATS, H_FEATS, NUM_CLASSES = 32, 16, 32, 8

    # deterministic ring graph (both directions) -> E = 64 directed edges
    src = np.arange(N)
    dst = (np.arange(N) + 1) % N
    rows = np.concatenate([src, dst])
    cols = np.concatenate([dst, src])
    edge_index = jnp.asarray(np.stack([rows, cols]), jnp.int32)

    # map each directed edge to the index of its undirected (row<col) counterpart
    upper = [(int(r), int(c)) for r, c in zip(rows, cols) if r < c]
    upper_map = {p: i for i, p in enumerate(upper)}
    k_undirected = jnp.asarray(
        np.array([upper_map[(min(int(r), int(c)), max(int(r), int(c)))]
                  for r, c in zip(rows, cols)], np.int32))

    # deterministic parameters / inputs
    key = jax.random.PRNGKey(0)
    k1, k2, kx = jax.random.split(key, 3)
    params = {
        "w1": jax.random.normal(k1, (IN_FEATS, H_FEATS), jnp.float32)
              * (1.0 / np.sqrt(IN_FEATS)),
        "b1": jnp.zeros((H_FEATS,), jnp.float32),
        "w2": jax.random.normal(k2, (H_FEATS, NUM_CLASSES), jnp.float32)
              * (1.0 / np.sqrt(H_FEATS)),
        "b2": jnp.zeros((NUM_CLASSES,), jnp.float32),
    }
    feat = jax.random.normal(kx, (N, IN_FEATS), jnp.float32)
    labels = jnp.asarray(np.arange(N) % NUM_CLASSES, jnp.int32)
    train_mask = jnp.asarray((np.arange(N) < N // 2).astype(np.float32))

    out, (n_feat, a_norm) = gtrans_forward(params, feat, edge_index,
                                           k_undirected, train_mask, labels)
    out = jax.block_until_ready(out)

    # Verify the Pallas backbone: tight vs. a bf16-matched JAX mirror, loose vs.
    # the full-f32 reference (kernel streams A/M/H1 in bf16, f32 accumulation).
    ref_bf16 = backbone_ref_bf16(params, n_feat, a_norm)
    np.testing.assert_allclose(np.asarray(out), np.asarray(ref_bf16),
                               rtol=1e-2, atol=1e-2)
    ref_f32 = backbone_ref(params, n_feat, a_norm)
    np.testing.assert_allclose(np.asarray(out), np.asarray(ref_f32),
                               rtol=5e-2, atol=5e-2)
    assert out.shape == (N, NUM_CLASSES) and out.dtype == jnp.float32
    assert bool(jnp.all(jnp.isfinite(out)))

    # Extra check: exercise the K-streamed-with-multiple-K-tiles and the
    # VMEM-resident-M code paths (k_pad > tile_k) on a slightly larger graph.
    kA, kM = jax.random.split(jax.random.PRNGKey(2))
    NA, HA = 160, 24
    a_t = jax.random.uniform(kA, (NA, NA), jnp.float32)
    m_t = jax.random.normal(kM, (NA, HA), jnp.float32)
    b_t = jnp.zeros((HA,), jnp.float32)
    tn, npad, tk, kpad = _plan_tiles(NA, tile_n=512, tile_k=128)
    a_tp = _pad_a_bf16(a_t, npad, kpad)
    got = gcn_propagate_pallas(a_tp, m_t, b_t, NA, tn, tk,
                               apply_relu=False, out_dtype=jnp.float32)
    got = jax.block_until_ready(got)
    want = (a_t.astype(jnp.bfloat16).astype(jnp.float32)
            @ m_t.astype(jnp.bfloat16).astype(jnp.float32))
    np.testing.assert_allclose(np.asarray(got), np.asarray(want),
                               rtol=1e-2, atol=1e-2)

    print("KERNEL_OK")
</pallas_src>

<mosaic_0001>
module attributes {stable_mosaic.version = 11 : i64} {
  func.func @_gcn_prop_kernel(%arg0: i32, %arg1: i32, %arg2: memref<16x128xbf16, #tpu.memory_space<vmem>>, %arg3: memref<128x128xbf16, #tpu.memory_space<vmem>>, %arg4: memref<1x128xf32, #tpu.memory_space<vmem>>, %arg5: memref<16x128xbf16, #tpu.memory_space<vmem>>, %arg6: memref<16x128xf32, #tpu.memory_space<vmem>>) attributes {dimension_semantics = [#tpu.dimension_semantics<parallel>, #tpu.dimension_semantics<arbitrary>], iteration_bounds = array<i64: 2, 1>, scalar_prefetch = 0 : i64, scratch_operands = 1 : i64, tpu.core_type = #tpu.core_type<tc>, window_params = [{transform_indices = @transform_0, window_bounds = array<i64: 16, 128>}, {transform_indices = @transform_1, window_bounds = array<i64: 128, 128>}, {pipeline_mode = #tpu.pipeline_mode<synchronous>, transform_indices = @transform_2, window_bounds = array<i64: 1, 128>}, {transform_indices = @transform_3, window_bounds = array<i64: 16, 128>}]} {
    %c0 = arith.constant 0 : index
    %c0_0 = arith.constant 0 : index
    %0 = vector.load %arg3[%c0, %c0_0] : memref<128x128xbf16, #tpu.memory_space<vmem>>, vector<128x128xbf16>
    %c0_1 = arith.constant 0 : index
    %c0_2 = arith.constant 0 : index
    %1 = vector.load %arg2[%c0_1, %c0_2] : memref<16x128xbf16, #tpu.memory_space<vmem>>, vector<16x128xbf16>
    %cst = arith.constant dense<0.000000e+00> : vector<16x128xf32>
    %2 = tpu.matmul %1, %0, %cst {dimension_numbers = #tpu.dot_dimension_numbers<[1], [0], [0], [1], [0, 0, 1, 1], [], []>} : vector<16x128xbf16>, vector<128x128xbf16>, vector<16x128xf32> -> vector<16x128xf32>
    %c0_i32 = arith.constant 0 : i32
    %3 = arith.cmpi eq, %arg1, %c0_i32 : i32
    %4 = arith.extui %3 : i1 to i32
    %c0_i32_3 = arith.constant 0 : i32
    %5 = arith.cmpi ne, %4, %c0_i32_3 : i32
    scf.if %5 {
      %c0_8 = arith.constant 0 : index
      %c0_9 = arith.constant 0 : index
      %12 = vector.load %arg6[%c0_8, %c0_9] : memref<16x128xf32, #tpu.memory_space<vmem>>, vector<16x128xf32>
      tpu.vector_store %arg6[%c0_8, %c0_9], %2 {strides = array<i32>} : memref<16x128xf32, #tpu.memory_space<vmem>>, vector<16x128xf32>,
    } else {
    }
    %c0_i32_4 = arith.constant 0 : i32
    %6 = arith.cmpi sgt, %arg1, %c0_i32_4 : i32
    %7 = arith.extui %6 : i1 to i32
    %c0_i32_5 = arith.constant 0 : i32
    %8 = arith.cmpi ne, %7, %c0_i32_5 : i32
    scf.if %8 {
      %c0_8 = arith.constant 0 : index
      %c0_9 = arith.constant 0 : index
      %12 = vector.load %arg6[%c0_8, %c0_9] : memref<16x128xf32, #tpu.memory_space<vmem>>, vector<16x128xf32>
      %13 = arith.addf %12, %2 : vector<16x128xf32>
      %c0_10 = arith.constant 0 : index
      %c0_11 = arith.constant 0 : index
      %14 = vector.load %arg6[%c0_10, %c0_11] : memref<16x128xf32, #tpu.memory_space<vmem>>, vector<16x128xf32>
      tpu.vector_store %arg6[%c0_10, %c0_11], %13 {strides = array<i32>} : memref<16x128xf32, #tpu.memory_space<vmem>>, vector<16x128xf32>,
    } else {
    }
    %c0_i32_6 = arith.constant 0 : i32
    %9 = arith.cmpi eq, %arg1, %c0_i32_6 : i32
    %10 = arith.extui %9 : i1 to i32
    %c0_i32_7 = arith.constant 0 : i32
    %11 = arith.cmpi ne, %10, %c0_i32_7 : i32
    scf.if %11 {
      %c0_8 = arith.constant 0 : index
      %c0_9 = arith.constant 0 : index
      %12 = vector.load %arg6[%c0_8, %c0_9] : memref<16x128xf32, #tpu.memory_space<vmem>>, vector<16x128xf32>
      %c0_10 = arith.constant 0 : index
      %c0_11 = arith.constant 0 : index
      %13 = vector.load %arg4[%c0_10, %c0_11] : memref<1x128xf32, #tpu.memory_space<vmem>>, vector<1x128xf32>
      %14 = vector.broadcast %13 : vector<1x128xf32> to vector<16x128xf32>
      %15 = arith.addf %12, %14 : vector<16x128xf32>
      %cst_12 = arith.constant 0.000000e+00 : f32
      %16 = vector.broadcast %cst_12 : f32 to vector<16x128xf32>
      %17 = arith.maximumf %15, %16 : vector<16x128xf32>
      %18 = arith.truncf %17 : vector<16x128xf32> to vector<16x128xbf16>
      %c0_13 = arith.constant 0 : index
      %c0_14 = arith.constant 0 : index
      %19 = vector.load %arg5[%c0_13, %c0_14] : memref<16x128xbf16, #tpu.memory_space<vmem>>, vector<16x128xbf16>
      tpu.vector_store %arg5[%c0_13, %c0_14], %18 {strides = array<i32>} : memref<16x128xbf16, #tpu.memory_space<vmem>>, vector<16x128xbf16>,
    } else {
    }
    return
  }
  func.func @transform_0(%arg0: i32, %arg1: i32) -> (i32, i32) {
    %c0_i32 = arith.constant 0 : i32
    return %arg0, %arg1 : i32, i32
  }
  func.func @transform_1(%arg0: i32, %arg1: i32) -> (i32, i32) {
    %c0_i32 = arith.constant 0 : i32
    %c0_i32_0 = arith.constant 0 : i32
    return %arg1, %c0_i32 : i32, i32
  }
  func.func @transform_2(%arg0: i32, %arg1: i32) -> (i32, i32) {
    %c0_i32 = arith.constant 0 : i32
    %c0_i32_0 = arith.constant 0 : i32
    %c0_i32_1 = arith.constant 0 : i32
    return %c0_i32, %c0_i32_0 : i32, i32
  }
  func.func @transform_3(%arg0: i32, %arg1: i32) -> (i32, i32) {
    %c0_i32 = arith.constant 0 : i32
    %c0_i32_0 = arith.constant 0 : i32
    return %arg0, %c0_i32 : i32, i32
  }
}

module attributes {stable_mosaic.version = 11 : i64} {
  func.func @_gcn_prop_kernel(%arg0: i32, %arg1: i32, %arg2: memref<16x128xbf16, #tpu.memory_space<vmem>>, %arg3: memref<128x128xbf16, #tpu.memory_space<vmem>>, %arg4: memref<1x128xf32, #tpu.memory_space<vmem>>, %arg5: memref<16x128xf32, #tpu.memory_space<vmem>>, %arg6: memref<16x128xf32, #tpu.memory_space<vmem>>) attributes {dimension_semantics = [#tpu.dimension_semantics<parallel>, #tpu.dimension_semantics<arbitrary>], iteration_bounds = array<i64: 2, 1>, scalar_prefetch = 0 : i64, scratch_operands = 1 : i64, tpu.core_type = #tpu.core_type<tc>, window_params = [{transform_indices = @transform_0, window_bounds = array<i64: 16, 128>}, {transform_indices = @transform_1, window_bounds = array<i64: 128, 128>}, {pipeline_mode = #tpu.pipeline_mode<synchronous>, transform_indices = @transform_2, window_bounds = array<i64: 1, 128>}, {transform_indices = @transform_3, window_bounds = array<i64: 16, 128>}]} {
    %c0 = arith.constant 0 : index
    %c0_0 = arith.constant 0 : index
    %0 = vector.load %arg3[%c0, %c0_0] : memref<128x128xbf16, #tpu.memory_space<vmem>>, vector<128x128xbf16>
    %c0_1 = arith.constant 0 : index
    %c0_2 = arith.constant 0 : index
    %1 = vector.load %arg2[%c0_1, %c0_2] : memref<16x128xbf16, #tpu.memory_space<vmem>>, vector<16x128xbf16>
    %cst = arith.constant dense<0.000000e+00> : vector<16x128xf32>
    %2 = tpu.matmul %1, %0, %cst {dimension_numbers = #tpu.dot_dimension_numbers<[1], [0], [0], [1], [0, 0, 1, 1], [], []>} : vector<16x128xbf16>, vector<128x128xbf16>, vector<16x128xf32> -> vector<16x128xf32>
    %c0_i32 = arith.constant 0 : i32
    %3 = arith.cmpi eq, %arg1, %c0_i32 : i32
    %4 = arith.extui %3 : i1 to i32
    %c0_i32_3 = arith.constant 0 : i32
    %5 = arith.cmpi ne, %4, %c0_i32_3 : i32
    scf.if %5 {
      %c0_8 = arith.constant 0 : index
      %c0_9 = arith.constant 0 : index
      %12 = vector.load %arg6[%c0_8, %c0_9] : memref<16x128xf32, #tpu.memory_space<vmem>>, vector<16x128xf32>
      tpu.vector_store %arg6[%c0_8, %c0_9], %2 {strides = array<i32>} : memref<16x128xf32, #tpu.memory_space<vmem>>, vector<16x128xf32>,
    } else {
    }
    %c0_i32_4 = arith.constant 0 : i32
    %6 = arith.cmpi sgt, %arg1, %c0_i32_4 : i32
    %7 = arith.extui %6 : i1 to i32
    %c0_i32_5 = arith.constant 0 : i32
    %8 = arith.cmpi ne, %7, %c0_i32_5 : i32
    scf.if %8 {
      %c0_8 = arith.constant 0 : index
      %c0_9 = arith.constant 0 : index
      %12 = vector.load %arg6[%c0_8, %c0_9] : memref<16x128xf32, #tpu.memory_space<vmem>>, vector<16x128xf32>
      %13 = arith.addf %12, %2 : vector<16x128xf32>
      %c0_10 = arith.constant 0 : index
      %c0_11 = arith.constant 0 : index
      %14 = vector.load %arg6[%c0_10, %c0_11] : memref<16x128xf32, #tpu.memory_space<vmem>>, vector<16x128xf32>
      tpu.vector_store %arg6[%c0_10, %c0_11], %13 {strides = array<i32>} : memref<16x128xf32, #tpu.memory_space<vmem>>, vector<16x128xf32>,
    } else {
    }
    %c0_i32_6 = arith.constant 0 : i32
    %9 = arith.cmpi eq, %arg1, %c0_i32_6 : i32
    %10 = arith.extui %9 : i1 to i32
    %c0_i32_7 = arith.constant 0 : i32
    %11 = arith.cmpi ne, %10, %c0_i32_7 : i32
    scf.if %11 {
      %c0_8 = arith.constant 0 : index
      %c0_9 = arith.constant 0 : index
      %12 = vector.load %arg6[%c0_8, %c0_9] : memref<16x128xf32, #tpu.memory_space<vmem>>, vector<16x128xf32>
      %c0_10 = arith.constant 0 : index
      %c0_11 = arith.constant 0 : index
      %13 = vector.load %arg4[%c0_10, %c0_11] : memref<1x128xf32, #tpu.memory_space<vmem>>, vector<1x128xf32>
      %14 = vector.broadcast %13 : vector<1x128xf32> to vector<16x128xf32>
      %15 = arith.addf %12, %14 : vector<16x128xf32>
      %c0_12 = arith.constant 0 : index
      %c0_13 = arith.constant 0 : index
      %16 = vector.load %arg5[%c0_12, %c0_13] : memref<16x128xf32, #tpu.memory_space<vmem>>, vector<16x128xf32>
      tpu.vector_store %arg5[%c0_12, %c0_13], %15 {strides = array<i32>} : memref<16x128xf32, #tpu.memory_space<vmem>>, vector<16x128xf32>,
    } else {
    }
    return
  }
  func.func @transform_0(%arg0: i32, %arg1: i32) -> (i32, i32) {
    %c0_i32 = arith.constant 0 : i32
    return %arg0, %arg1 : i32, i32
  }
  func.func @transform_1(%arg0: i32, %arg1: i32) -> (i32, i32) {
    %c0_i32 = arith.constant 0 : i32
    %c0_i32_0 = arith.constant 0 : i32
    return %arg1, %c0_i32 : i32, i32
  }
  func.func @transform_2(%arg0: i32, %arg1: i32) -> (i32, i32) {
    %c0_i32 = arith.constant 0 : i32
    %c0_i32_0 = arith.constant 0 : i32
    %c0_i32_1 = arith.constant 0 : i32
    return %c0_i32, %c0_i32_0 : i32, i32
  }
  func.func @transform_3(%arg0: i32, %arg1: i32) -> (i32, i32) {
    %c0_i32 = arith.constant 0 : i32
    %c0_i32_0 = arith.constant 0 : i32
    return %arg0, %c0_i32 : i32, i32
  }
}

</mosaic_0001>

<bundles_post_ra>
// kernel: backbone_pallas.2
= control target key start
LH: loop header
LB: loop body
LE: loop exit
PB: predicated region body
PF: predicated region fallthrough
CT: control target
= control target key end

     0   :  { %s575_s12 = smov 0   ;;  %s577_s13 = smov 0   ;;  %s640_s0 = inlined_call_operand.vmem [shape: bf16[32,128], index: 0, kind: input, shape index: {}]   ;;  %s641_s1 = inlined_call_operand.vmem [shape: bf16[128,128], index: 1, kind: input, shape index: {}]   ;;  %s642_s2 = inlined_call_operand.vmem [shape: f32[1,128], index: 2, kind: input, shape index: {}]   ;;  %s643_s3 = inlined_call_operand.vmem [shape: bf16[32,128], index: 3, kind: output, shape index: {}]  }
   0x1   :  { %s579_s14 = smov 0  }
   0x2 LB: > { %s25_s15 = sadd.s32 1, %s547_s13  ;;  %p449_p0 = scmp.ge.s32.totalorder %s551_s14, 1  ;;  %s551_s14 = sphi %s579_s14, %s13_s14   ;;  %s547_s13 = sphi %s577_s13, %s645_s13   ;;  %s543_s12 = sphi %s575_s12, %s644_s12  }
   0x3   : > { %p27_p1 = scmp.ge.s32.totalorder %s25_s15, 2  ;;  %p166_p2 = scmp.lt.s32.totalorder %s551_s14, 3 }
   0x5   : > { %s647_s15 = smov (%p27_p1, %s25_s15), 0  ;;  %p167_p3 = pnand %p449_p0, %p166_p2 }
   0x6   : > { %v520_v0 = vld [vmem:[%s641_s1] sm:$0xff] (!%p167_p3)   ;;  %v553_v1 = vmov (!%p167_p3), 0.0   ;;  %v521_v2 = vld [vmem:[%s641_s1 + $0x8] sm:$0xff] (!%p167_p3)   ;;  %vm554_vm0 = vmmov (!%p167_p3), 0   ;;  %s450_s20 = sshll.u32 (!%p167_p3), %s543_s12, 1  ;;  %v522_v3 = vld [vmem:[%s641_s1 + $0x10] sm:$0xff] (!%p167_p3)  }
   0x7   : > { %170 = sbr.rel (%p167_p3) target bundleno = 260 (0x104), region = 32  ;;  %474 = vmatprep.subr.bf16.mxu0 (!%p167_p3), %v553_v1  ;;  %490 = vmatprep.mubr.msk.bf16.mxu0 (!%p167_p3), %vm554_vm0, %v553_v1  ;;  %p198_p4 = scmp.lt.s32.totalorder (!%p167_p3), %s450_s20, 3  ;;  %v523_v4 = vld [vmem:[%s641_s1 + $0x18] sm:$0xff] (!%p167_p3)   ;;  %v524_v5 = vld [vmem:[%s641_s1 + $0x20] sm:$0xff] (!%p167_p3)   ;;  %v525_v6 = vld [vmem:[%s641_s1 + $0x28] sm:$0xff] (!%p167_p3)  }
   0x8   : > { %475 = vmatpush3.bf16.msra.mxu0 (!%p167_p3), %v520_v0  ;;  %v526_v7 = vld [vmem:[%s641_s1 + $0x30] sm:$0xff] (!%p167_p3)   ;;  %v527_v8 = vld [vmem:[%s641_s1 + $0x38] sm:$0xff] (!%p167_p3)   ;;  %p212_p5 = scmp.lt.s32.totalorder (!%p167_p3), %s543_s12, 1  ;;  %v462_v10 = vld [vmem:[%s642_s2] ss:$0 sm:$0xff] (!%p167_p3) }
   0x9   : > { %476 = vmatprep.subr.bf16.mxu0 (!%p167_p3), %v553_v1 }
   0xc   : > { %477 = vmatpush3.bf16.msra.mxu0 (!%p167_p3), %v521_v2 }
   0xd   : > { %478 = vmatprep.subr.bf16.mxu0 (!%p167_p3), %v553_v1 }
   0xe   : > { %s649_s20 = smov (!%p198_p4, %s450_s20), 3  ;;  %s651_s12 = smov (!%p212_p5, %s543_s12), 1 }
   0xf   : > { %s451_s23 = sshll.u32 %s649_s20, 2  ;;  %s452_s16 = sshll.u32 %s651_s12, 3 }
  0x10   : > { %s204_s26 = scalar_lea.vmem %s640_s0, %s451_s23  ;;  %479 = vmatpush3.bf16.msra.mxu0 %v522_v3  ;;  %s215_s19 = scalar_lea.vmem %s643_s3, %s452_s16 }
  0x11   : > { %480 = vmatprep.subr.bf16.mxu0 %v553_v1  ;;  %v528_v9 = vld [vmem:[%s204_s26] sm:$0xff]  }
  0x14   : > { %481 = vmatpush3.bf16.msra.mxu0 %v523_v4 }
  0x15   : > { %482 = vmatprep.subr.bf16.mxu0 %v553_v1 }
  0x18   : > { %483 = vmatpush3.bf16.msra.mxu0 %v524_v5 }
  0x19   : > { %484 = vmatprep.subr.bf16.mxu0 %v553_v1 }
  0x1c   : > { %485 = vmatpush3.bf16.msra.mxu0 %v525_v6 }
  0x1d   : > { %486 = vmatprep.subr.bf16.mxu0 %v553_v1 }
  0x20   : > { %487 = vmatpush3.bf16.msra.mxu0 %v526_v7 }
  0x21   : > { %488 = vmatprep.subr.bf16.mxu0 %v553_v1 }
  0x24   : > { %489 = vmatpush3.bf16.msra.mxu0 %v527_v8 }
  0x27   : > { %491 = vmatmul.mubr.bf16.vlgmr.msra.gmra.mrb[0].mxu0 %v528_v9 }
  0xfa   : > { %v323_v11 = vpop.f32.mrb[0].mxu0 }
  0xfb   : > { %v358_v12 = vadd.f32 %v462_v10, %v323_v11  ;;  %v492_v13 = vpop.f32.mrb[1].mxu0 }
  0xfc   : > { %v326_v14 = vpop.f32.mrb[2].mxu0 }
  0xfd   : > { %v359_v15 = vadd.f32 %v462_v10, %v326_v14  ;;  %v493_v16 = vpop.f32.mrb[3].mxu0  ;;  %v360_v17 = vmax.f32 %v358_v12, 0.0 }
  0xff   : > { %v361_v18 = vmax.f32 %v359_v15, 0.0 }
 0x101   : > { %v362_v19 = vpack.c.bf16 %v361_v18, %v360_v17 }
 0x103   : > { %363 = vst [vmem:[%s215_s19] sm:$0xff] %v362_v19 }
 0x104 PF: > { %s13_s14 = sadd.s32 1, %s551_s14   ;;  %s644_s12 = smov %s547_s13 }
 0x105   : > { %p10_p6 = scmp.ge.s32.totalorder %s13_s14, 4   ;;  %s645_s13 = smov %s647_s15 }
 0x107   :  { %12 = sbr.rel (!%p10_p6) target bundleno = 2 (0x2), region = 77 }

// kernel: backbone_pallas.3
= control target key start
LH: loop header
LB: loop body
LE: loop exit
PB: predicated region body
PF: predicated region fallthrough
CT: control target
= control target key end

     0   :  { %s580_s12 = smov 0   ;;  %s582_s13 = smov 0   ;;  %s640_s0 = inlined_call_operand.vmem [shape: bf16[32,128], index: 0, kind: input, shape index: {}]   ;;  %s641_s1 = inlined_call_operand.vmem [shape: bf16[128,128], index: 1, kind: input, shape index: {}]   ;;  %s642_s2 = inlined_call_operand.vmem [shape: f32[1,128], index: 2, kind: input, shape index: {}]   ;;  %s643_s3 = inlined_call_operand.vmem [shape: f32[32,128], index: 3, kind: output, shape index: {}]  }
   0x1   :  { %s584_s14 = smov 0  }
   0x2 LB: > { %s25_s15 = sadd.s32 1, %s552_s13  ;;  %p453_p0 = scmp.ge.s32.totalorder %s556_s14, 1  ;;  %s556_s14 = sphi %s584_s14, %s13_s14   ;;  %s552_s13 = sphi %s582_s13, %s645_s13   ;;  %s548_s12 = sphi %s580_s12, %s644_s12  }
   0x3   : > { %p27_p1 = scmp.ge.s32.totalorder %s25_s15, 2  ;;  %p166_p2 = scmp.lt.s32.totalorder %s556_s14, 3 }
   0x5   : > { %s647_s15 = smov (%p27_p1, %s25_s15), 0  ;;  %p167_p3 = pnand %p453_p0, %p166_p2 }
   0x6   : > { %v525_v0 = vld [vmem:[%s641_s1] sm:$0xff] (!%p167_p3)   ;;  %v558_v1 = vmov (!%p167_p3), 0.0   ;;  %v526_v2 = vld [vmem:[%s641_s1 + $0x8] sm:$0xff] (!%p167_p3)   ;;  %vm559_vm0 = vmmov (!%p167_p3), 0   ;;  %s454_s20 = sshll.u32 (!%p167_p3), %s548_s12, 1  ;;  %v527_v3 = vld [vmem:[%s641_s1 + $0x10] sm:$0xff] (!%p167_p3)  }
   0x7   : > { %170 = sbr.rel (%p167_p3) target bundleno = 256 (0x100), region = 32  ;;  %479 = vmatprep.subr.bf16.mxu0 (!%p167_p3), %v558_v1  ;;  %495 = vmatprep.mubr.msk.bf16.mxu0 (!%p167_p3), %vm559_vm0, %v558_v1  ;;  %p199_p4 = scmp.lt.s32.totalorder (!%p167_p3), %s454_s20, 3  ;;  %v528_v4 = vld [vmem:[%s641_s1 + $0x18] sm:$0xff] (!%p167_p3)   ;;  %v529_v5 = vld [vmem:[%s641_s1 + $0x20] sm:$0xff] (!%p167_p3)   ;;  %v530_v6 = vld [vmem:[%s641_s1 + $0x28] sm:$0xff] (!%p167_p3)  }
   0x8   : > { %480 = vmatpush3.bf16.msra.mxu0 (!%p167_p3), %v525_v0  ;;  %v531_v7 = vld [vmem:[%s641_s1 + $0x30] sm:$0xff] (!%p167_p3)   ;;  %v532_v8 = vld [vmem:[%s641_s1 + $0x38] sm:$0xff] (!%p167_p3)   ;;  %v467_v10 = vld [vmem:[%s642_s2] ss:$0 sm:$0xff] (!%p167_p3) }
   0x9   : > { %481 = vmatprep.subr.bf16.mxu0 (!%p167_p3), %v558_v1 }
   0xc   : > { %482 = vmatpush3.bf16.msra.mxu0 (!%p167_p3), %v526_v2 }
   0xd   : > { %483 = vmatprep.subr.bf16.mxu0 (!%p167_p3), %v558_v1 }
   0xe   : > { %s649_s20 = smov (!%p199_p4, %s454_s20), 3 }
   0xf   : > { %s455_s23 = sshll.u32 %s649_s20, 2  ;;  %s457_s10 = sshll.u32 %s649_s20, 3 }
  0x10   : > { %s205_s26 = scalar_lea.vmem %s640_s0, %s455_s23  ;;  %484 = vmatpush3.bf16.msra.mxu0 %v527_v3  ;;  %s217_s18 = scalar_lea.vmem %s643_s3, %s457_s10 }
  0x11   : > { %485 = vmatprep.subr.bf16.mxu0 %v558_v1  ;;  %v533_v9 = vld [vmem:[%s205_s26] sm:$0xff]  }
  0x14   : > { %486 = vmatpush3.bf16.msra.mxu0 %v528_v4 }
  0x15   : > { %487 = vmatprep.subr.bf16.mxu0 %v558_v1 }
  0x18   : > { %488 = vmatpush3.bf16.msra.mxu0 %v529_v5 }
  0x19   : > { %489 = vmatprep.subr.bf16.mxu0 %v558_v1 }
  0x1c   : > { %490 = vmatpush3.bf16.msra.mxu0 %v530_v6 }
  0x1d   : > { %491 = vmatprep.subr.bf16.mxu0 %v558_v1 }
  0x20   : > { %492 = vmatpush3.bf16.msra.mxu0 %v531_v7 }
  0x21   : > { %493 = vmatprep.subr.bf16.mxu0 %v558_v1 }
  0x24   : > { %494 = vmatpush3.bf16.msra.mxu0 %v532_v8 }
  0x27   : > { %496 = vmatmul.mubr.bf16.vlgmr.msra.gmra.mrb[0].mxu0 %v533_v9 }
  0xfa   : > { %v326_v11 = vpop.f32.mrb[0].mxu0 }
  0xfb   : > { %v361_v12 = vadd.f32 %v467_v10, %v326_v11  ;;  %v497_v13 = vpop.f32.mrb[1].mxu0 }
  0xfc   : > { %v329_v14 = vpop.f32.mrb[2].mxu0 }
  0xfd   : > { %363 = vst [vmem:[%s217_s18] sm:$0xff] %v361_v12  ;;  %v362_v15 = vadd.f32 %v467_v10, %v329_v14  ;;  %v498_v16 = vpop.f32.mrb[3].mxu0 }
  0xff   : > { %364 = vst [vmem:[%s217_s18 + $0x8] sm:$0xff] %v362_v15 }
 0x100 PF: > { %s13_s14 = sadd.s32 1, %s556_s14   ;;  %s644_s12 = smov %s552_s13 }
 0x101   : > { %p10_p5 = scmp.ge.s32.totalorder %s13_s14, 4   ;;  %s645_s13 = smov %s647_s15 }
 0x103   :  { %12 = sbr.rel (!%p10_p5) target bundleno = 2 (0x2), region = 77 }

</bundles_post_ra>
